<compile_context>
chip_gen: v6e
topology: v6e:2x2x1
jax: 0.10.0
libtpu: 0.0.40
codegen_flags: <defaults>
</compile_context>

<pallas_src>
import functools

import jax
import jax.numpy as jnp
from jax import lax
from jax.experimental import pallas as pl
from jax.experimental.pallas import tpu as pltpu


# Field spec mirroring the torch `fields` objects:
#   ("cat", d) -> Categorical Data field with d categories (softmax over block)
#   ("num", 1) -> numerical field (tanh on a single column)
FIELDS = (("cat", 3), ("num", 1), ("cat", 4), ("num", 1))
OUTPUT_SIZE = sum(d for _, d in FIELDS)  # = 9

BN_EPS = 1e-5


def _mlp_kernel(x_ref,
                w1_ref, g1_ref, be1_ref,
                w2_ref, g2_ref, be2_ref,
                w3_ref, b3_ref,
                out_ref,
                s1_ref, q1_ref, s2_ref, q2_ref,
                *, fields, batch, out_size, compute_dtype):
    phase = pl.program_id(0)   # 0: bn1 stats, 1: bn2 stats, 2: produce output
    tile = pl.program_id(1)    # batch tile index
    inv_b = 1.0 / batch

    def mm(a, b):
        return jnp.dot(a.astype(compute_dtype), b.astype(compute_dtype),
                       preferred_element_type=jnp.float32)

    # fc1 (bias dropped: train-mode BN subtracts the batch mean, so a constant
    # per-column shift is exactly cancelled).
    a1 = mm(x_ref[...], w1_ref[...])

    # Phases 0/1 produce no output; write zeros so the revisited HBM block is
    # deterministic before phase 2 overwrites it with the real values.
    @pl.when(phase != 2)
    def _():
        out_ref[...] = jnp.zeros_like(out_ref)

    # ---------------- phase 0: accumulate bn1 batch statistics --------------
    @pl.when(phase == 0)
    def _():
        @pl.when(tile == 0)
        def _():
            s1_ref[...] = jnp.zeros_like(s1_ref)
            q1_ref[...] = jnp.zeros_like(q1_ref)
        s1_ref[...] += jnp.sum(a1, axis=0, keepdims=True)
        q1_ref[...] += jnp.sum(a1 * a1, axis=0, keepdims=True)

    # ---------------- phases 1/2: bn1 -> relu -> fc2 ------------------------
    @pl.when(phase >= 1)
    def _():
        mean1 = s1_ref[...] * inv_b
        var1 = q1_ref[...] * inv_b - mean1 * mean1
        h1 = (a1 - mean1) * lax.rsqrt(var1 + BN_EPS) * g1_ref[...] + be1_ref[...]
        h1 = jnp.maximum(h1, 0.0)
        a2 = mm(h1, w2_ref[...])          # fc2, bias dropped (cancelled by bn2)

        # phase 1: accumulate bn2 batch statistics
        @pl.when(phase == 1)
        def _():
            @pl.when(tile == 0)
            def _():
                s2_ref[...] = jnp.zeros_like(s2_ref)
                q2_ref[...] = jnp.zeros_like(q2_ref)
            s2_ref[...] += jnp.sum(a2, axis=0, keepdims=True)
            q2_ref[...] += jnp.sum(a2 * a2, axis=0, keepdims=True)

        # phase 2: bn2 -> relu -> fc3 -> fused per-field heads
        @pl.when(phase == 2)
        def _():
            mean2 = s2_ref[...] * inv_b
            var2 = q2_ref[...] * inv_b - mean2 * mean2
            h2 = (a2 - mean2) * lax.rsqrt(var2 + BN_EPS) * g2_ref[...] + be2_ref[...]
            h2 = jnp.maximum(h2, 0.0)
            logits = mm(h2, w3_ref[...]) + b3_ref[...]

            # Fused heads: one global row max + one exp for all fields.
            # Per-field softmax is shift-invariant, and the global max keeps
            # every exponent <= 0, so this is numerically safe.
            m = jnp.max(logits, axis=1, keepdims=True)
            e = jnp.exp(logits - m)

            col = lax.broadcasted_iota(jnp.int32, (1, out_size), 1)
            denom = jnp.ones_like(e)          # 1.0 keeps num columns finite
            num_mask = col < 0                # all-False, built from iota
            cur = 0
            for kind, dim in fields:          # static Python metadata
                fmask = (col >= cur) & (col < cur + dim)
                if kind == "cat":
                    fsum = jnp.sum(jnp.where(fmask, e, 0.0),
                                   axis=1, keepdims=True)
                    denom = jnp.where(fmask, fsum, denom)
                else:
                    num_mask = num_mask | fmask
                cur += dim

            # EUP approximate reciprocal + one Newton step (cheap VPU refine
            # keeps the result within ~1e-7 relative of an exact divide).
            r = pl.reciprocal(denom, approx=True)
            r = r * (2.0 - denom * r)
            soft = e * r
            out_ref[...] = jnp.where(num_mask, jnp.tanh(logits), soft)


def generative_model_forward(x, params, fields=FIELDS, *,
                             block_rows=4096, compute_dtype=jnp.float32):
    """Forward pass of the heterogeneous-data generative model (train-mode BN)."""
    B, F_in = x.shape
    out_size = sum(d for _, d in fields)
    H1 = params["w1"].shape[1]
    H2 = params["w2"].shape[1]

    # Batch tile: must divide B and be sublane aligned (8) unless it is the
    # whole batch; otherwise fall back to a single tile (always legal).
    tb = min(block_rows, B)
    if B % tb != 0 or (tb != B and tb % 8 != 0):
        tb = B
    nb = B // tb

    kernel = functools.partial(
        _mlp_kernel, fields=tuple(fields), batch=B,
        out_size=out_size, compute_dtype=compute_dtype)

    def tile_spec(shape):
        return pl.BlockSpec(shape, lambda p, i: (i, 0))

    def const_spec(a):
        return pl.BlockSpec(a.shape, lambda p, i: (0, 0))

    weights = (params["w1"], params["g1"], params["be1"],
               params["w2"], params["g2"], params["be2"],
               params["w3"], params["b3"])

    grid_spec = pltpu.PrefetchScalarGridSpec(
        num_scalar_prefetch=0,
        grid=(3, nb),                       # (phase, batch tile); phase outermost
        in_specs=[tile_spec((tb, F_in))] + [const_spec(a) for a in weights],
        out_specs=tile_spec((tb, out_size)),
        scratch_shapes=[pltpu.VMEM((1, H1), jnp.float32),   # bn1 sum
                        pltpu.VMEM((1, H1), jnp.float32),   # bn1 sum of squares
                        pltpu.VMEM((1, H2), jnp.float32),   # bn2 sum
                        pltpu.VMEM((1, H2), jnp.float32)])  # bn2 sum of squares

    return pl.pallas_call(
        kernel,
        out_shape=jax.ShapeDtypeStruct((B, out_size), jnp.float32),
        grid_spec=grid_spec,
        compiler_params=pltpu.CompilerParams(
            # Both axes are ordered reductions (BN stats accumulate across the
            # batch-tile axis; phases must run in order), hence "arbitrary".
            dimension_semantics=("arbitrary", "arbitrary"),
            # Explicit limit; safe on v5e/v6e (128 MiB) and v7x (64 MiB) VMEM.
            vmem_limit_bytes=32 * 1024 * 1024),
    )(x, *weights)


def reference_forward(x, params, fields=FIELDS):
    """Pure-JAX reference with the full torch semantics (incl. fc1/fc2 biases)."""
    def bn(h, g, b):
        mean = jnp.mean(h, axis=0, keepdims=True)
        var = jnp.mean((h - mean) ** 2, axis=0, keepdims=True)
        return (h - mean) * lax.rsqrt(var + BN_EPS) * g + b

    h = x @ params["w1"] + params["b1"]
    h = jnp.maximum(bn(h, params["g1"], params["be1"]), 0.0)
    h = h @ params["w2"] + params["b2"]
    h = jnp.maximum(bn(h, params["g2"], params["be2"]), 0.0)
    out = h @ params["w3"] + params["b3"]

    pieces, cur = [], 0
    for kind, dim in fields:
        if kind == "cat":
            pieces.append(jax.nn.softmax(out[:, cur:cur + dim], axis=1))
        else:
            pieces.append(jnp.tanh(out[:, cur:cur + dim]))
        cur += dim
    return jnp.concatenate(pieces, axis=1)


def init_params(key, input_size, h1, h2, out_size):
    ks = jax.random.split(key, 6)

    def linear(kw, kb, fan_in, fan_out):
        bound = 1.0 / jnp.sqrt(fan_in)
        w = jax.random.uniform(kw, (fan_in, fan_out), jnp.float32, -bound, bound)
        b = jax.random.uniform(kb, (1, fan_out), jnp.float32, -bound, bound)
        return w, b

    w1, b1 = linear(ks[0], ks[1], input_size, h1)
    w2, b2 = linear(ks[2], ks[3], h1, h2)
    w3, b3 = linear(ks[4], ks[5], h2, out_size)
    return dict(
        w1=w1, b1=b1, g1=jnp.ones((1, h1), jnp.float32), be1=jnp.zeros((1, h1), jnp.float32),
        w2=w2, b2=b2, g2=jnp.ones((1, h2), jnp.float32), be2=jnp.zeros((1, h2), jnp.float32),
        w3=w3, b3=b3,
    )


if __name__ == "__main__":
    input_size, hidden_1, hidden_2 = 16, 32, 32
    batch = 64

    key = jax.random.PRNGKey(0)
    k_x, k_p = jax.random.split(key)
    x = jax.random.normal(k_x, (batch, input_size), jnp.float32)
    params = init_params(k_p, input_size, hidden_1, hidden_2, OUTPUT_SIZE)

    # Multi-tile pipelined path: 2 batch tiles of 32 rows x 3 BN phases.
    out = jax.block_until_ready(generative_model_forward(x, params, block_rows=32))
    ref = reference_forward(x, params)
    assert out.shape == (batch, OUTPUT_SIZE)
    assert jnp.allclose(out, ref, atol=1e-4, rtol=1e-4), \
        "mismatch vs reference (tiled path)"

    # Single-tile path (whole small batch in one block).
    out1 = jax.block_until_ready(generative_model_forward(x[:8], params))
    ref1 = reference_forward(x[:8], params)
    assert jnp.allclose(out1, ref1, atol=1e-4, rtol=1e-4), \
        "mismatch vs reference (single-tile path)"

    print("KERNEL_OK")
</pallas_src>

<mosaic_0001>
module attributes {stable_mosaic.version = 11 : i64} {
  func.func @_mlp_kernel(%arg0: i32, %arg1: i32, %arg2: memref<32x16xf32, #tpu.memory_space<vmem>>, %arg3: memref<16x32xf32, #tpu.memory_space<vmem>>, %arg4: memref<1x32xf32, #tpu.memory_space<vmem>>, %arg5: memref<1x32xf32, #tpu.memory_space<vmem>>, %arg6: memref<32x32xf32, #tpu.memory_space<vmem>>, %arg7: memref<1x32xf32, #tpu.memory_space<vmem>>, %arg8: memref<1x32xf32, #tpu.memory_space<vmem>>, %arg9: memref<32x9xf32, #tpu.memory_space<vmem>>, %arg10: memref<1x9xf32, #tpu.memory_space<vmem>>, %arg11: memref<32x9xf32, #tpu.memory_space<vmem>>, %arg12: memref<1x32xf32, #tpu.memory_space<vmem>>, %arg13: memref<1x32xf32, #tpu.memory_space<vmem>>, %arg14: memref<1x32xf32, #tpu.memory_space<vmem>>, %arg15: memref<1x32xf32, #tpu.memory_space<vmem>>) attributes {dimension_semantics = [#tpu.dimension_semantics<arbitrary>, #tpu.dimension_semantics<arbitrary>], iteration_bounds = array<i64: 3, 2>, scalar_prefetch = 0 : i64, scratch_operands = 4 : i64, tpu.core_type = #tpu.core_type<tc>, window_params = [{transform_indices = @transform_0, window_bounds = array<i64: 32, 16>}, {pipeline_mode = #tpu.pipeline_mode<synchronous>, transform_indices = @transform_1, window_bounds = array<i64: 16, 32>}, {pipeline_mode = #tpu.pipeline_mode<synchronous>, transform_indices = @transform_2, window_bounds = array<i64: 1, 32>}, {pipeline_mode = #tpu.pipeline_mode<synchronous>, transform_indices = @transform_3, window_bounds = array<i64: 1, 32>}, {pipeline_mode = #tpu.pipeline_mode<synchronous>, transform_indices = @transform_4, window_bounds = array<i64: 32, 32>}, {pipeline_mode = #tpu.pipeline_mode<synchronous>, transform_indices = @transform_5, window_bounds = array<i64: 1, 32>}, {pipeline_mode = #tpu.pipeline_mode<synchronous>, transform_indices = @transform_6, window_bounds = array<i64: 1, 32>}, {pipeline_mode = #tpu.pipeline_mode<synchronous>, transform_indices = @transform_7, window_bounds = array<i64: 32, 9>}, {pipeline_mode = #tpu.pipeline_mode<synchronous>, transform_indices = @transform_8, window_bounds = array<i64: 1, 9>}, {transform_indices = @transform_9, window_bounds = array<i64: 32, 9>}]} {
    %c0 = arith.constant 0 : index
    %c0_0 = arith.constant 0 : index
    %0 = vector.load %arg2[%c0, %c0_0] : memref<32x16xf32, #tpu.memory_space<vmem>>, vector<32x16xf32>
    %c0_1 = arith.constant 0 : index
    %c0_2 = arith.constant 0 : index
    %1 = vector.load %arg3[%c0_1, %c0_2] : memref<16x32xf32, #tpu.memory_space<vmem>>, vector<16x32xf32>
    %cst = arith.constant dense<0.000000e+00> : vector<32x32xf32>
    %2 = tpu.matmul %0, %1, %cst {dimension_numbers = #tpu.dot_dimension_numbers<[1], [0], [0], [1], [0, 0, 1, 1], [], []>} : vector<32x16xf32>, vector<16x32xf32>, vector<32x32xf32> -> vector<32x32xf32>
    %c2_i32 = arith.constant 2 : i32
    %3 = arith.cmpi ne, %arg0, %c2_i32 : i32
    %4 = arith.extui %3 : i1 to i32
    %c0_i32 = arith.constant 0 : i32
    %5 = arith.cmpi ne, %4, %c0_i32 : i32
    scf.if %5 {
      %cst_6 = arith.constant 0.000000e+00 : f32
      %12 = vector.broadcast %cst_6 : f32 to vector<32x9xf32>
      %c0_7 = arith.constant 0 : index
      %c0_8 = arith.constant 0 : index
      %13 = vector.load %arg11[%c0_7, %c0_8] : memref<32x9xf32, #tpu.memory_space<vmem>>, vector<32x9xf32>
      tpu.vector_store %arg11[%c0_7, %c0_8], %12 {strides = array<i32>} : memref<32x9xf32, #tpu.memory_space<vmem>>, vector<32x9xf32>,
    } else {
    }
    %c0_i32_3 = arith.constant 0 : i32
    %6 = arith.cmpi eq, %arg0, %c0_i32_3 : i32
    %7 = arith.extui %6 : i1 to i32
    %c0_i32_4 = arith.constant 0 : i32
    %8 = arith.cmpi ne, %7, %c0_i32_4 : i32
    scf.if %8 {
      %c0_i32_6 = arith.constant 0 : i32
      %12 = arith.cmpi eq, %arg1, %c0_i32_6 : i32
      %13 = arith.extui %12 : i1 to i32
      %c0_i32_7 = arith.constant 0 : i32
      %14 = arith.cmpi ne, %13, %c0_i32_7 : i32
      scf.if %14 {
        %cst_18 = arith.constant 0.000000e+00 : f32
        %26 = vector.broadcast %cst_18 : f32 to vector<1x32xf32>
        %c0_19 = arith.constant 0 : index
        %c0_20 = arith.constant 0 : index
        %27 = vector.load %arg12[%c0_19, %c0_20] : memref<1x32xf32, #tpu.memory_space<vmem>>, vector<1x32xf32>
        tpu.vector_store %arg12[%c0_19, %c0_20], %26 {strides = array<i32>} : memref<1x32xf32, #tpu.memory_space<vmem>>, vector<1x32xf32>,
        %cst_21 = arith.constant 0.000000e+00 : f32
        %28 = vector.broadcast %cst_21 : f32 to vector<1x32xf32>
        %c0_22 = arith.constant 0 : index
        %c0_23 = arith.constant 0 : index
        %29 = vector.load %arg13[%c0_22, %c0_23] : memref<1x32xf32, #tpu.memory_space<vmem>>, vector<1x32xf32>
        tpu.vector_store %arg13[%c0_22, %c0_23], %28 {strides = array<i32>} : memref<1x32xf32, #tpu.memory_space<vmem>>, vector<1x32xf32>,
      } else {
      }
      %c0_8 = arith.constant 0 : index
      %c0_9 = arith.constant 0 : index
      %15 = vector.load %arg12[%c0_8, %c0_9] : memref<1x32xf32, #tpu.memory_space<vmem>>, vector<1x32xf32>
      %cst_10 = arith.constant dense<0.000000e+00> : vector<32xf32>
      %16 = vector.multi_reduction <add>, %2, %cst_10 [0] : vector<32x32xf32> to vector<32xf32>
      %17 = vector.shape_cast %16 : vector<32xf32> to vector<1x32xf32>
      %18 = arith.addf %15, %17 : vector<1x32xf32>
      %c0_11 = arith.constant 0 : index
      %c0_12 = arith.constant 0 : index
      %19 = vector.load %arg12[%c0_11, %c0_12] : memref<1x32xf32, #tpu.memory_space<vmem>>, vector<1x32xf32>
      tpu.vector_store %arg12[%c0_11, %c0_12], %18 {strides = array<i32>} : memref<1x32xf32, #tpu.memory_space<vmem>>, vector<1x32xf32>,
      %c0_13 = arith.constant 0 : index
      %c0_14 = arith.constant 0 : index
      %20 = vector.load %arg13[%c0_13, %c0_14] : memref<1x32xf32, #tpu.memory_space<vmem>>, vector<1x32xf32>
      %21 = arith.mulf %2, %2 : vector<32x32xf32>
      %cst_15 = arith.constant dense<0.000000e+00> : vector<32xf32>
      %22 = vector.multi_reduction <add>, %21, %cst_15 [0] : vector<32x32xf32> to vector<32xf32>
      %23 = vector.shape_cast %22 : vector<32xf32> to vector<1x32xf32>
      %24 = arith.addf %20, %23 : vector<1x32xf32>
      %c0_16 = arith.constant 0 : index
      %c0_17 = arith.constant 0 : index
      %25 = vector.load %arg13[%c0_16, %c0_17] : memref<1x32xf32, #tpu.memory_space<vmem>>, vector<1x32xf32>
      tpu.vector_store %arg13[%c0_16, %c0_17], %24 {strides = array<i32>} : memref<1x32xf32, #tpu.memory_space<vmem>>, vector<1x32xf32>,
    } else {
    }
    %c1_i32 = arith.constant 1 : i32
    %9 = arith.cmpi sge, %arg0, %c1_i32 : i32
    %10 = arith.extui %9 : i1 to i32
    %c0_i32_5 = arith.constant 0 : i32
    %11 = arith.cmpi ne, %10, %c0_i32_5 : i32
    scf.if %11 {
      %c0_6 = arith.constant 0 : index
      %c0_7 = arith.constant 0 : index
      %12 = vector.load %arg12[%c0_6, %c0_7] : memref<1x32xf32, #tpu.memory_space<vmem>>, vector<1x32xf32>
      %cst_8 = arith.constant 1.562500e-02 : f32
      %13 = vector.broadcast %cst_8 : f32 to vector<1x32xf32>
      %14 = arith.mulf %12, %13 : vector<1x32xf32>
      %c0_9 = arith.constant 0 : index
      %c0_10 = arith.constant 0 : index
      %15 = vector.load %arg13[%c0_9, %c0_10] : memref<1x32xf32, #tpu.memory_space<vmem>>, vector<1x32xf32>
      %cst_11 = arith.constant 1.562500e-02 : f32
      %16 = vector.broadcast %cst_11 : f32 to vector<1x32xf32>
      %17 = arith.mulf %15, %16 : vector<1x32xf32>
      %18 = arith.mulf %14, %14 : vector<1x32xf32>
      %19 = arith.subf %17, %18 : vector<1x32xf32>
      %20 = vector.broadcast %14 : vector<1x32xf32> to vector<32x32xf32>
      %21 = arith.subf %2, %20 : vector<32x32xf32>
      %cst_12 = arith.constant 9.99999974E-6 : f32
      %22 = vector.broadcast %cst_12 : f32 to vector<1x32xf32>
      %23 = arith.addf %19, %22 : vector<1x32xf32>
      %24 = math.rsqrt %23 : vector<1x32xf32>
      %25 = vector.broadcast %24 : vector<1x32xf32> to vector<32x32xf32>
      %26 = arith.mulf %21, %25 : vector<32x32xf32>
      %c0_13 = arith.constant 0 : index
      %c0_14 = arith.constant 0 : index
      %27 = vector.load %arg4[%c0_13, %c0_14] : memref<1x32xf32, #tpu.memory_space<vmem>>, vector<1x32xf32>
      %28 = vector.broadcast %27 : vector<1x32xf32> to vector<32x32xf32>
      %29 = arith.mulf %26, %28 : vector<32x32xf32>
      %c0_15 = arith.constant 0 : index
      %c0_16 = arith.constant 0 : index
      %30 = vector.load %arg5[%c0_15, %c0_16] : memref<1x32xf32, #tpu.memory_space<vmem>>, vector<1x32xf32>
      %31 = vector.broadcast %30 : vector<1x32xf32> to vector<32x32xf32>
      %32 = arith.addf %29, %31 : vector<32x32xf32>
      %cst_17 = arith.constant 0.000000e+00 : f32
      %33 = vector.broadcast %cst_17 : f32 to vector<32x32xf32>
      %34 = arith.maximumf %32, %33 : vector<32x32xf32>
      %c0_18 = arith.constant 0 : index
      %c0_19 = arith.constant 0 : index
      %35 = vector.load %arg6[%c0_18, %c0_19] : memref<32x32xf32, #tpu.memory_space<vmem>>, vector<32x32xf32>
      %cst_20 = arith.constant dense<0.000000e+00> : vector<32x32xf32>
      %36 = tpu.matmul %34, %35, %cst_20 {dimension_numbers = #tpu.dot_dimension_numbers<[1], [0], [0], [1], [0, 0, 1, 1], [], []>} : vector<32x32xf32>, vector<32x32xf32>, vector<32x32xf32> -> vector<32x32xf32>
      %c1_i32_21 = arith.constant 1 : i32
      %37 = arith.cmpi eq, %arg0, %c1_i32_21 : i32
      %38 = arith.extui %37 : i1 to i32
      %c0_i32_22 = arith.constant 0 : i32
      %39 = arith.cmpi ne, %38, %c0_i32_22 : i32
      scf.if %39 {
        %c0_i32_25 = arith.constant 0 : i32
        %43 = arith.cmpi eq, %arg1, %c0_i32_25 : i32
        %44 = arith.extui %43 : i1 to i32
        %c0_i32_26 = arith.constant 0 : i32
        %45 = arith.cmpi ne, %44, %c0_i32_26 : i32
        scf.if %45 {
          %cst_37 = arith.constant 0.000000e+00 : f32
          %57 = vector.broadcast %cst_37 : f32 to vector<1x32xf32>
          %c0_38 = arith.constant 0 : index
          %c0_39 = arith.constant 0 : index
          %58 = vector.load %arg14[%c0_38, %c0_39] : memref<1x32xf32, #tpu.memory_space<vmem>>, vector<1x32xf32>
          tpu.vector_store %arg14[%c0_38, %c0_39], %57 {strides = array<i32>} : memref<1x32xf32, #tpu.memory_space<vmem>>, vector<1x32xf32>,
          %cst_40 = arith.constant 0.000000e+00 : f32
          %59 = vector.broadcast %cst_40 : f32 to vector<1x32xf32>
          %c0_41 = arith.constant 0 : index
          %c0_42 = arith.constant 0 : index
          %60 = vector.load %arg15[%c0_41, %c0_42] : memref<1x32xf32, #tpu.memory_space<vmem>>, vector<1x32xf32>
          tpu.vector_store %arg15[%c0_41, %c0_42], %59 {strides = array<i32>} : memref<1x32xf32, #tpu.memory_space<vmem>>, vector<1x32xf32>,
        } else {
        }
        %c0_27 = arith.constant 0 : index
        %c0_28 = arith.constant 0 : index
        %46 = vector.load %arg14[%c0_27, %c0_28] : memref<1x32xf32, #tpu.memory_space<vmem>>, vector<1x32xf32>
        %cst_29 = arith.constant dense<0.000000e+00> : vector<32xf32>
        %47 = vector.multi_reduction <add>, %36, %cst_29 [0] : vector<32x32xf32> to vector<32xf32>
        %48 = vector.shape_cast %47 : vector<32xf32> to vector<1x32xf32>
        %49 = arith.addf %46, %48 : vector<1x32xf32>
        %c0_30 = arith.constant 0 : index
        %c0_31 = arith.constant 0 : index
        %50 = vector.load %arg14[%c0_30, %c0_31] : memref<1x32xf32, #tpu.memory_space<vmem>>, vector<1x32xf32>
        tpu.vector_store %arg14[%c0_30, %c0_31], %49 {strides = array<i32>} : memref<1x32xf32, #tpu.memory_space<vmem>>, vector<1x32xf32>,
        %c0_32 = arith.constant 0 : index
        %c0_33 = arith.constant 0 : index
        %51 = vector.load %arg15[%c0_32, %c0_33] : memref<1x32xf32, #tpu.memory_space<vmem>>, vector<1x32xf32>
        %52 = arith.mulf %36, %36 : vector<32x32xf32>
        %cst_34 = arith.constant dense<0.000000e+00> : vector<32xf32>
        %53 = vector.multi_reduction <add>, %52, %cst_34 [0] : vector<32x32xf32> to vector<32xf32>
        %54 = vector.shape_cast %53 : vector<32xf32> to vector<1x32xf32>
        %55 = arith.addf %51, %54 : vector<1x32xf32>
        %c0_35 = arith.constant 0 : index
        %c0_36 = arith.constant 0 : index
        %56 = vector.load %arg15[%c0_35, %c0_36] : memref<1x32xf32, #tpu.memory_space<vmem>>, vector<1x32xf32>
        tpu.vector_store %arg15[%c0_35, %c0_36], %55 {strides = array<i32>} : memref<1x32xf32, #tpu.memory_space<vmem>>, vector<1x32xf32>,
      } else {
      }
      %c2_i32_23 = arith.constant 2 : i32
      %40 = arith.cmpi eq, %arg0, %c2_i32_23 : i32
      %41 = arith.extui %40 : i1 to i32
      %c0_i32_24 = arith.constant 0 : i32
      %42 = arith.cmpi ne, %41, %c0_i32_24 : i32
      scf.if %42 {
        %c0_25 = arith.constant 0 : index
        %c0_26 = arith.constant 0 : index
        %43 = vector.load %arg14[%c0_25, %c0_26] : memref<1x32xf32, #tpu.memory_space<vmem>>, vector<1x32xf32>
        %cst_27 = arith.constant 1.562500e-02 : f32
        %44 = vector.broadcast %cst_27 : f32 to vector<1x32xf32>
        %45 = arith.mulf %43, %44 : vector<1x32xf32>
        %c0_28 = arith.constant 0 : index
        %c0_29 = arith.constant 0 : index
        %46 = vector.load %arg15[%c0_28, %c0_29] : memref<1x32xf32, #tpu.memory_space<vmem>>, vector<1x32xf32>
        %cst_30 = arith.constant 1.562500e-02 : f32
        %47 = vector.broadcast %cst_30 : f32 to vector<1x32xf32>
        %48 = arith.mulf %46, %47 : vector<1x32xf32>
        %49 = arith.mulf %45, %45 : vector<1x32xf32>
        %50 = arith.subf %48, %49 : vector<1x32xf32>
        %51 = vector.broadcast %45 : vector<1x32xf32> to vector<32x32xf32>
        %52 = arith.subf %36, %51 : vector<32x32xf32>
        %cst_31 = arith.constant 9.99999974E-6 : f32
        %53 = vector.broadcast %cst_31 : f32 to vector<1x32xf32>
        %54 = arith.addf %50, %53 : vector<1x32xf32>
        %55 = math.rsqrt %54 : vector<1x32xf32>
        %56 = vector.broadcast %55 : vector<1x32xf32> to vector<32x32xf32>
        %57 = arith.mulf %52, %56 : vector<32x32xf32>
        %c0_32 = arith.constant 0 : index
        %c0_33 = arith.constant 0 : index
        %58 = vector.load %arg7[%c0_32, %c0_33] : memref<1x32xf32, #tpu.memory_space<vmem>>, vector<1x32xf32>
        %59 = vector.broadcast %58 : vector<1x32xf32> to vector<32x32xf32>
        %60 = arith.mulf %57, %59 : vector<32x32xf32>
        %c0_34 = arith.constant 0 : index
        %c0_35 = arith.constant 0 : index
        %61 = vector.load %arg8[%c0_34, %c0_35] : memref<1x32xf32, #tpu.memory_space<vmem>>, vector<1x32xf32>
        %62 = vector.broadcast %61 : vector<1x32xf32> to vector<32x32xf32>
        %63 = arith.addf %60, %62 : vector<32x32xf32>
        %cst_36 = arith.constant 0.000000e+00 : f32
        %64 = vector.broadcast %cst_36 : f32 to vector<32x32xf32>
        %65 = arith.maximumf %63, %64 : vector<32x32xf32>
        %c0_37 = arith.constant 0 : index
        %c0_38 = arith.constant 0 : index
        %66 = vector.load %arg9[%c0_37, %c0_38] : memref<32x9xf32, #tpu.memory_space<vmem>>, vector<32x9xf32>
        %cst_39 = arith.constant dense<0.000000e+00> : vector<32x9xf32>
        %67 = tpu.matmul %65, %66, %cst_39 {dimension_numbers = #tpu.dot_dimension_numbers<[1], [0], [0], [1], [0, 0, 1, 1], [], []>} : vector<32x32xf32>, vector<32x9xf32>, vector<32x9xf32> -> vector<32x9xf32>
        %c0_40 = arith.constant 0 : index
        %c0_41 = arith.constant 0 : index
        %68 = vector.load %arg10[%c0_40, %c0_41] : memref<1x9xf32, #tpu.memory_space<vmem>>, vector<1x9xf32>
        %69 = vector.broadcast %68 : vector<1x9xf32> to vector<32x9xf32>
        %70 = arith.addf %67, %69 : vector<32x9xf32>
        %cst_42 = arith.constant dense<0xFF800000> : vector<32xf32>
        %71 = vector.multi_reduction <maximumf>, %70, %cst_42 [1] : vector<32x9xf32> to vector<32xf32>
        %72 = vector.shape_cast %71 : vector<32xf32> to vector<32x1xf32>
        %73 = vector.broadcast %72 : vector<32x1xf32> to vector<32x9xf32>
        %74 = arith.subf %70, %73 : vector<32x9xf32>
        %75 = math.exp %74 : vector<32x9xf32>
        %76 = tpu.iota {dimensions = array<i32: 1>} : vector<1x9xi32>
        %cst_43 = arith.constant 1.000000e+00 : f32
        %77 = vector.broadcast %cst_43 : f32 to vector<32x9xf32>
        %c0_i32_44 = arith.constant 0 : i32
        %78 = vector.broadcast %c0_i32_44 : i32 to vector<1x9xi32>
        %79 = arith.cmpi slt, %76, %78 : vector<1x9xi32>
        %c0_i32_45 = arith.constant 0 : i32
        %80 = vector.broadcast %c0_i32_45 : i32 to vector<1x9xi32>
        %81 = arith.cmpi sge, %76, %80 : vector<1x9xi32>
        %c3_i32 = arith.constant 3 : i32
        %82 = vector.broadcast %c3_i32 : i32 to vector<1x9xi32>
        %83 = arith.cmpi slt, %76, %82 : vector<1x9xi32>
        %84 = arith.andi %81, %83 : vector<1x9xi1>
        %cst_46 = arith.constant 0.000000e+00 : f32
        %85 = vector.shape_cast %84 : vector<1x9xi1> to vector<1x9xi1>
        %86 = vector.broadcast %85 : vector<1x9xi1> to vector<32x9xi1>
        %87 = vector.broadcast %cst_46 : f32 to vector<32x9xf32>
        %88 = arith.select %86, %75, %87 : vector<32x9xi1>, vector<32x9xf32>
        %cst_47 = arith.constant dense<0.000000e+00> : vector<32xf32>
        %89 = vector.multi_reduction <add>, %88, %cst_47 [1] : vector<32x9xf32> to vector<32xf32>
        %90 = vector.shape_cast %89 : vector<32xf32> to vector<32x1xf32>
        %91 = vector.shape_cast %84 : vector<1x9xi1> to vector<1x9xi1>
        %92 = vector.broadcast %91 : vector<1x9xi1> to vector<32x9xi1>
        %93 = vector.shape_cast %90 : vector<32x1xf32> to vector<32x1xf32>
        %94 = vector.broadcast %93 : vector<32x1xf32> to vector<32x9xf32>
        %95 = arith.select %92, %94, %77 : vector<32x9xi1>, vector<32x9xf32>
        %c3_i32_48 = arith.constant 3 : i32
        %96 = vector.broadcast %c3_i32_48 : i32 to vector<1x9xi32>
        %97 = arith.cmpi sge, %76, %96 : vector<1x9xi32>
        %c4_i32 = arith.constant 4 : i32
        %98 = vector.broadcast %c4_i32 : i32 to vector<1x9xi32>
        %99 = arith.cmpi slt, %76, %98 : vector<1x9xi32>
        %100 = arith.andi %97, %99 : vector<1x9xi1>
        %101 = arith.ori %79, %100 : vector<1x9xi1>
        %c4_i32_49 = arith.constant 4 : i32
        %102 = vector.broadcast %c4_i32_49 : i32 to vector<1x9xi32>
        %103 = arith.cmpi sge, %76, %102 : vector<1x9xi32>
        %c8_i32 = arith.constant 8 : i32
        %104 = vector.broadcast %c8_i32 : i32 to vector<1x9xi32>
        %105 = arith.cmpi slt, %76, %104 : vector<1x9xi32>
        %106 = arith.andi %103, %105 : vector<1x9xi1>
        %cst_50 = arith.constant 0.000000e+00 : f32
        %107 = vector.shape_cast %106 : vector<1x9xi1> to vector<1x9xi1>
        %108 = vector.broadcast %107 : vector<1x9xi1> to vector<32x9xi1>
        %109 = vector.broadcast %cst_50 : f32 to vector<32x9xf32>
        %110 = arith.select %108, %75, %109 : vector<32x9xi1>, vector<32x9xf32>
        %cst_51 = arith.constant dense<0.000000e+00> : vector<32xf32>
        %111 = vector.multi_reduction <add>, %110, %cst_51 [1] : vector<32x9xf32> to vector<32xf32>
        %112 = vector.shape_cast %111 : vector<32xf32> to vector<32x1xf32>
        %113 = vector.shape_cast %106 : vector<1x9xi1> to vector<1x9xi1>
        %114 = vector.broadcast %113 : vector<1x9xi1> to vector<32x9xi1>
        %115 = vector.shape_cast %112 : vector<32x1xf32> to vector<32x1xf32>
        %116 = vector.broadcast %115 : vector<32x1xf32> to vector<32x9xf32>
        %117 = arith.select %114, %116, %95 : vector<32x9xi1>, vector<32x9xf32>
        %c8_i32_52 = arith.constant 8 : i32
        %118 = vector.broadcast %c8_i32_52 : i32 to vector<1x9xi32>
        %119 = arith.cmpi sge, %76, %118 : vector<1x9xi32>
        %c9_i32 = arith.constant 9 : i32
        %120 = vector.broadcast %c9_i32 : i32 to vector<1x9xi32>
        %121 = arith.cmpi slt, %76, %120 : vector<1x9xi32>
        %122 = arith.andi %119, %121 : vector<1x9xi1>
        %123 = arith.ori %101, %122 : vector<1x9xi1>
        %124 = tpu.reciprocal %117 {approx = true} : vector<32x9xf32> -> vector<32x9xf32>
        %125 = arith.mulf %117, %124 : vector<32x9xf32>
        %cst_53 = arith.constant 2.000000e+00 : f32
        %126 = vector.broadcast %cst_53 : f32 to vector<32x9xf32>
        %127 = arith.subf %126, %125 : vector<32x9xf32>
        %128 = arith.mulf %124, %127 : vector<32x9xf32>
        %129 = arith.mulf %75, %128 : vector<32x9xf32>
        %130 = math.tanh %70 : vector<32x9xf32>
        %131 = vector.shape_cast %123 : vector<1x9xi1> to vector<1x9xi1>
        %132 = vector.broadcast %131 : vector<1x9xi1> to vector<32x9xi1>
        %133 = arith.select %132, %130, %129 : vector<32x9xi1>, vector<32x9xf32>
        %c0_54 = arith.constant 0 : index
        %c0_55 = arith.constant 0 : index
        %134 = vector.load %arg11[%c0_54, %c0_55] : memref<32x9xf32, #tpu.memory_space<vmem>>, vector<32x9xf32>
        tpu.vector_store %arg11[%c0_54, %c0_55], %133 {strides = array<i32>} : memref<32x9xf32, #tpu.memory_space<vmem>>, vector<32x9xf32>,
      } else {
      }
    } else {
    }
    return
  }
  func.func @transform_0(%arg0: i32, %arg1: i32) -> (i32, i32) {
    %c0_i32 = arith.constant 0 : i32
    %c0_i32_0 = arith.constant 0 : i32
    return %arg1, %c0_i32 : i32, i32
  }
  func.func @transform_1(%arg0: i32, %arg1: i32) -> (i32, i32) {
    %c0_i32 = arith.constant 0 : i32
    %c0_i32_0 = arith.constant 0 : i32
    %c0_i32_1 = arith.constant 0 : i32
    return %c0_i32, %c0_i32_0 : i32, i32
  }
  func.func @transform_2(%arg0: i32, %arg1: i32) -> (i32, i32) {
    %c0_i32 = arith.constant 0 : i32
    %c0_i32_0 = arith.constant 0 : i32
    %c0_i32_1 = arith.constant 0 : i32
    return %c0_i32, %c0_i32_0 : i32, i32
  }
  func.func @transform_3(%arg0: i32, %arg1: i32) -> (i32, i32) {
    %c0_i32 = arith.constant 0 : i32
    %c0_i32_0 = arith.constant 0 : i32
    %c0_i32_1 = arith.constant 0 : i32
    return %c0_i32, %c0_i32_0 : i32, i32
  }
  func.func @transform_4(%arg0: i32, %arg1: i32) -> (i32, i32) {
    %c0_i32 = arith.constant 0 : i32
    %c0_i32_0 = arith.constant 0 : i32
    %c0_i32_1 = arith.constant 0 : i32
    return %c0_i32, %c0_i32_0 : i32, i32
  }
  func.func @transform_5(%arg0: i32, %arg1: i32) -> (i32, i32) {
    %c0_i32 = arith.constant 0 : i32
    %c0_i32_0 = arith.constant 0 : i32
    %c0_i32_1 = arith.constant 0 : i32
    return %c0_i32, %c0_i32_0 : i32, i32
  }
  func.func @transform_6(%arg0: i32, %arg1: i32) -> (i32, i32) {
    %c0_i32 = arith.constant 0 : i32
    %c0_i32_0 = arith.constant 0 : i32
    %c0_i32_1 = arith.constant 0 : i32
    return %c0_i32, %c0_i32_0 : i32, i32
  }
  func.func @transform_7(%arg0: i32, %arg1: i32) -> (i32, i32) {
    %c0_i32 = arith.constant 0 : i32
    %c0_i32_0 = arith.constant 0 : i32
    %c0_i32_1 = arith.constant 0 : i32
    return %c0_i32, %c0_i32_0 : i32, i32
  }
  func.func @transform_8(%arg0: i32, %arg1: i32) -> (i32, i32) {
    %c0_i32 = arith.constant 0 : i32
    %c0_i32_0 = arith.constant 0 : i32
    %c0_i32_1 = arith.constant 0 : i32
    return %c0_i32, %c0_i32_0 : i32, i32
  }
  func.func @transform_9(%arg0: i32, %arg1: i32) -> (i32, i32) {
    %c0_i32 = arith.constant 0 : i32
    %c0_i32_0 = arith.constant 0 : i32
    return %arg1, %c0_i32 : i32, i32
  }
}

</mosaic_0001>

<bundles_post_ra>
// kernel: tpu_custom_call.1
= control target key start
LH: loop header
LB: loop body
LE: loop exit
PB: predicated region body
PF: predicated region fallthrough
CT: control target
= control target key end

     0   :  { %s1351_s30 = smov 0   ;;  %s1353_s10 = smov 0   ;;  %s1654_s0 = inlined_call_operand.vmem [shape: f32[64,16], index: 0, kind: input, shape index: {}]   ;;  %s1655_s1 = inlined_call_operand.vmem [shape: f32[16,32], index: 1, kind: input, shape index: {}]   ;;  %s1656_s2 = inlined_call_operand.vmem [shape: f32[1,32], index: 2, kind: input, shape index: {}]   ;;  %s1657_s3 = inlined_call_operand.vmem [shape: f32[1,32], index: 3, kind: input, shape index: {}]   ;;  %s1658_s4 = inlined_call_operand.vmem [shape: f32[32,32], index: 4, kind: input, shape index: {}]   ;;  %s1659_s5 = inlined_call_operand.vmem [shape: f32[1,32], index: 5, kind: input, shape index: {}]   ;;  %s1660_s6 = inlined_call_operand.vmem [shape: f32[1,32], index: 6, kind: input, shape index: {}]   ;;  %s1661_s7 = inlined_call_operand.vmem [shape: f32[32,9], index: 7, kind: input, shape index: {}]   ;;  %s1662_s8 = inlined_call_operand.vmem [shape: f32[1,9], index: 8, kind: input, shape index: {}]   ;;  %s1663_s9 = inlined_call_operand.vmem [shape: f32[64,9], index: 9, kind: output, shape index: {}]  }
   0x1   :  { %s1355_s11 = smov 0   ;;  %s1357_s12 = smov 0  }
   0x2   :  { %s1359_s13 = smov 0  }
   0x3 LB: > { %s28_s14 = sadd.s32 1, %s1288_s11  ;;  %s31_s15 = sadd.s32 1, %s1292_s12  ;;  %s1296_s13 = sphi %s1359_s13, %s19_s13   ;;  %s1292_s12 = sphi %s1357_s12, %s1671_s12   ;;  %s1288_s11 = sphi %s1355_s11, %s1670_s11   ;;  %s1284_s10 = sphi %s1353_s10, %s1669_s10   ;;  %s1280_s30 = sphi %s1351_s30, %s1668_s30  }
   0x4   : > { %p29_p0 = scmp.ge.s32.totalorder %s28_s14, 2  ;;  %p1076_p1 = scmp.ge.s32.totalorder %s1296_s13, 1 }
   0x5   : > { %p300_p2 = scmp.lt.s32.totalorder %s1296_s13, 7 }
   0x6   : > { %s1673_s14 = smov (%p29_p0, %s28_s14), 0  ;;  %s1675_s15 = smov (!%p29_p0, %s31_s15), %s1292_s12 }
   0x7   : > { %p301_p3 = pnand %p1076_p1, %p300_p2  ;;  %p33_p4 = scmp.ge.s32.totalorder %s1675_s15, 3 }
   0x8   : > { %s1077_s20 = sshll.u32 (!%p301_p3), %s1280_s30, 2  ;;  %p1085_p6 = scmp.eq.s32.totalorder (!%p301_p3), %s1284_s10, 2 }
   0x9   : > { %s1677_s15 = smov (%p33_p4, %s1675_s15), 0  ;;  %304 = sbr.rel (%p301_p3) target bundleno = 1102 (0x44e), region = 56 }
   0xa   : > { %p337_p5 = scmp.lt.s32.totalorder (!%p301_p3), %s1077_s20, 7 }
   0xe   : > { %v353_v0 = vld [vmem:[%s1655_s1 + $0x8] sm:$0xff]  ;;  %v352_v1 = vld [vmem:[%s1655_s1] sm:$0xff]  ;;  %s1679_s20 = smov (!%p337_p5, %s1077_s20), 7  ;;  %vm354_vm0 = vcmask 130048  }
   0xf   : > { %1129 = vmatprep.subr.mxu0 %v353_v0  ;;  %1167 = vmatprep.subr.mxu1 %v353_v0  ;;  %s1078_s21 = sshll.u32 %s1679_s20, 3 }
  0x10   : > { %1130 = vmatpush3.msra.mxu0 %v353_v0  ;;  %1169 = vmatpush3.msra.mxu1 %v353_v0  ;;  %s340_s24 = scalar_lea.vmem %s1654_s0, %s1078_s21  ;;  %s1398_s27 = scalar_lea.vmem %s1663_s9, %s1078_s21 }
  0x11   : > { %1131 = vmatprep.subr.mxu0 %v352_v1  ;;  %1168 = vmatprep.subr.mxu1 %v352_v1  ;;  %v348_v2 = vld [vmem:[%s340_s24] sm:$0xff]  ;;  %v350_v3 = vld [vmem:[%s340_s24 + $0x10] sm:$0xff]  ;;  %v349_v4 = vld [vmem:[%s340_s24 + $0x8] sm:$0xff] }
  0x12   : > { %1132 = vmatpush3.msra.mxu0 %v352_v1  ;;  %1170 = vmatpush3.msra.mxu1 %v352_v1  ;;  %v351_v5 = vld [vmem:[%s340_s24 + $0x18] sm:$0xff] }
  0x13   : > { %1133 = vmatprep.mubr.msk.f32.mxu0 %vm354_vm0, %v348_v2  ;;  %1136 = vmatprep.mubr.msk.f32.mxu1 %vm354_vm0, %v350_v3 }
  0x14   : > { %1134 = vmatmul.mubr.msk.f32.vlgmr.msra.gmra.mxu0 %vm354_vm0, %v349_v4  ;;  %1137 = vmatmul.mubr.msk.f32.vlgmr.msra.gmra.mxu1 %vm354_vm0, %v351_v5 }
  0xd2   : > { %455 = sbr.rel (%p1085_p6) target bundleno = 218 (0xda), region = 60 }
  0xd4   : > { %v1400_v6 = vpop.f32.mrf.mxu0  ;;  %v1402_v7 = vpop.f32.mrf.mxu1 }
  0xd6   : > { %v1404_v8 = vpop.f32.mrf.mxu0  ;;  %v1406_v9 = vpop.f32.mrf.mxu1 }
  0xd7   : > { %vm456_vm1 = vcmask 72704   ;;  %v1298_v10 = vmov 0.0  }
  0xd8   : > { %457 = vst.msk [vmem:[%s1398_s27] sm:$0xff] %vm456_vm1, %v1298_v10  ;;  %458 = vst.msk [vmem:[%s1398_s27 + $0x8] sm:$0xff] %vm456_vm1, %v1298_v10 }
  0xd9   : > { %459 = vst.msk [vmem:[%s1398_s27 + $0x10] sm:$0xff] %vm456_vm1, %v1298_v10  ;;  %460 = vst.msk [vmem:[%s1398_s27 + $0x18] sm:$0xff] %vm456_vm1, %v1298_v10 }
  0xda PF: > { %p1086_p7 = scmp.ne.s32.totalorder %s1284_s10, 0 }
  0xdb   : > { %p1087_p8 = scmp.ne.s32.totalorder (!%p1086_p7), %s1280_s30, 0 }
  0xdc   : > { %464 = sbr.rel (%p1086_p7) target bundleno = 256 (0x100), region = 64 }
  0xe1   : > { %468 = sbr.rel (%p1087_p8) target bundleno = 232 (0xe8), region = 68 }
  0xe6   : > { %vm469_vm2 = vcmask 253952   ;;  %v1299_v11 = vmov 0.0  }
  0xe7   : > { %470 = vst.msk [vmem:[#allocation2] sm:$0x1] %vm469_vm2, %v1299_v11  ;;  %471 = vst.msk [vmem:[#allocation3] sm:$0x1] %vm469_vm2, %v1299_v11 }
  0xe8 PF: > { %vm473_vm3 = vcmask 261120   ;;  %v491_v12 = vmul.f32 %v1404_v8, %v1404_v8  ;;  %v492_v13 = vmul.f32 %v1400_v6, %v1400_v6  ;;  %v493_v18 = vmul.f32 %v1406_v9, %v1406_v9 }
  0xe9   : > { %v474_v14 = vsel %vm473_vm3, %v1404_v8, 0.0  ;;  %v475_v15 = vsel %vm473_vm3, %v1400_v6, 0.0  ;;  %v477_v16 = vsel %vm473_vm3, %v1406_v9, 0.0  ;;  %v494_v19 = vmul.f32 %v1402_v7, %v1402_v7 }
  0xea   : > { %v476_v17 = vadd.f32 %v475_v15, %v474_v14  ;;  %v495_v20 = vsel %vm473_vm3, %v491_v12, 0.0  ;;  %v479_v21 = vsel %vm473_vm3, %v1402_v7, 0.0  ;;  %v496_v22 = vsel %vm473_vm3, %v492_v13, 0.0 }
  0xeb   : > { %v497_v24 = vadd.f32 %v496_v22, %v495_v20  ;;  %v498_v25 = vsel %vm473_vm3, %v493_v18, 0.0  ;;  %v500_v26 = vsel %vm473_vm3, %v494_v19, 0.0  ;;  %vm488_vm4 = vcmask 253952  }
  0xec   : > { %v478_v23 = vadd.f32 %v477_v16, %v476_v17 }
  0xed   : > { %v499_v28 = vadd.f32 %v498_v25, %v497_v24 }
  0xee   : > { %v480_v27 = vadd.f32 %v479_v21, %v478_v23  ;;  %v472_v39 = vld [vmem:[#allocation2] sm:$0x1]  ;;  %v490_v42 = vld [vmem:[#allocation3] sm:$0x1] }
  0xef   : > { %v501_v30 = vadd.f32 %v500_v26, %v499_v28 }
  0xf0   : > { %v481_v29 = vrot.slane %v480_v27, 4 }
  0xf1   : > { %v502_v32 = vrot.slane %v501_v30, 4 }
  0xf2   : > { %v482_v31 = vadd.f32 %v481_v29, %v480_v27 }
  0xf3   : > { %v503_v34 = vadd.f32 %v502_v32, %v501_v30 }
  0xf4   : > { %v483_v33 = vrot.slane %v482_v31, 2 }
  0xf5   : > { %v504_v36 = vrot.slane %v503_v34, 2 }
  0xf6   : > { %v484_v35 = vadd.f32 %v483_v33, %v482_v31 }
  0xf7   : > { %v505_v38 = vadd.f32 %v504_v36, %v503_v34 }
  0xf8   : > { %v485_v37 = vrot.slane %v484_v35, 1 }
  0xf9   : > { %v506_v41 = vrot.slane %v505_v38, 1 }
  0xfa   : > { %v486_v40 = vadd.f32 %v485_v37, %v484_v35 }
  0xfb   : > { %v507_v44 = vadd.f32 %v506_v41, %v505_v38 }
  0xfc   : > { %v487_v43 = vadd.f32 %v486_v40, %v472_v39 }
  0xfd   : > { %v508_v45 = vadd.f32 %v507_v44, %v490_v42 }
  0xfe   : > { %489 = vst.msk [vmem:[#allocation2] sm:$0x1] %vm488_vm4, %v487_v43 }
  0xff   : > { %509 = vst.msk [vmem:[#allocation3] sm:$0x1] %vm488_vm4, %v508_v45 }
 0x100 PF: > { %p1088_p9 = scmp.lt.s32.totalorder %s1284_s10, 1 }
 0x101   : > { %p1095_p10 = scmp.ne.s32.totalorder (!%p1088_p9), %s1284_s10, 1 }
 0x102   : > { %513 = sbr.rel (%p1088_p9) target bundleno = 1102 (0x44e), region = 72 }
 0x107   : > { %v571_v46 = vld [vmem:[%s1658_s4 + $0x18] sm:$0xff]  ;;  %v570_v47 = vld [vmem:[%s1658_s4 + $0x10] sm:$0xff]  ;;  %v514_v48 = vld [vmem:[#allocation2] sm:$0x1]  ;;  %v521_v56 = vlaneseq  ;;  %vm572_vm5 = vcmask 261120   ;;  %p1096_p11 = scmp.ne.s32.totalorder (!%p1095_p10), %s1280_s30, 0 }
 0x108   : > { %1139 = vmatprep.subr.mxu0 %v571_v46  ;;  %1171 = vmatprep.subr.mxu1 %v571_v46  ;;  %v516_v49 = vld [vmem:[#allocation3] sm:$0x1]  ;;  %v569_v50 = vld [vmem:[%s1658_s4 + $0x8] sm:$0xff]  ;;  %v515_v51 = vmul.f32 0.015625, %v514_v48  ;;  %v1089_v3 = vld [vmem:[%s1656_s2] ss:$0 sm:$0xff] }
 0x109   : > { %1140 = vmatpush3.msra.mxu0 %v571_v46  ;;  %1175 = vmatpush3.msra.mxu1 %v571_v46  ;;  %v517_v52 = vmul.f32 0.015625, %v516_v49  ;;  %v568_v53 = vld [vmem:[%s1658_s4] sm:$0xff]  ;;  %v522_v58 = vshrl.u32 %v521_v56, 7 }
 0x10a   : > { %1141 = vmatprep.subr.mxu0 %v570_v47  ;;  %1172 = vmatprep.subr.mxu1 %v570_v47  ;;  %v518_v54 = vmul.f32 %v515_v51, %v515_v51 }
 0x10b   : > { %1142 = vmatpush3.msra.mxu0 %v570_v47  ;;  %1176 = vmatpush3.msra.mxu1 %v570_v47  ;;  %v1441_v59 = vsub.s32 0, %v522_v58 }
 0x10c   : > { %1143 = vmatprep.subr.mxu0 %v569_v50  ;;  %1173 = vmatprep.subr.mxu1 %v569_v50  ;;  %v519_v55 = vsub.f32 %v517_v52, %v518_v54 }
 0x10d   : > { %1144 = vmatpush3.msra.mxu0 %v569_v50  ;;  %1177 = vmatpush3.msra.mxu1 %v569_v50  ;;  %v524_v60 = vrot.slane %v515_v51, %v1441_v59 }
 0x10e   : > { %1145 = vmatprep.subr.mxu0 %v568_v53  ;;  %1174 = vmatprep.subr.mxu1 %v568_v53  ;;  %v530_v57 = vadd.f32 1e-05, %v519_v55 }
 0x10f   : > { %1146 = vmatpush3.msra.mxu0 %v568_v53  ;;  %1178 = vmatpush3.msra.mxu1 %v568_v53  ;;  %v526_v61 = vsub.f32 %v1404_v8, %v524_v60  ;;  %v528_v62 = vsub.f32 %v1406_v9, %v524_v60  ;;  %v527_v63 = vsub.f32 %v1400_v6, %v524_v60  ;;  %v1090_v8 = vld [vmem:[%s1657_s3] ss:$0 sm:$0xff] }
 0x110   : > { %1230 = vrsqrt.f32 %v530_v57  ;;  %v529_v0 = vsub.f32 %v1402_v7, %v524_v60 }
 0x11d   : > { %v1231_v1 = vpop.eup %1230 }
 0x11e   : > { %v536_v2 = vrot.slane %v1231_v1, %v1441_v59 }
 0x120   : > { %v538_v4 = vmul.f32 %v536_v2, %v526_v61  ;;  %v540_v5 = vmul.f32 %v536_v2, %v528_v62  ;;  %v539_v10 = vmul.f32 %v536_v2, %v527_v63  ;;  %v541_v11 = vmul.f32 %v536_v2, %v529_v0 }
 0x122   : > { %v549_v9 = vmul.f32 %v1089_v3, %v538_v4  ;;  %v551_v12 = vmul.f32 %v1089_v3, %v540_v5  ;;  %v550_v6 = vmul.f32 %v1089_v3, %v539_v10  ;;  %v552_v13 = vmul.f32 %v1089_v3, %v541_v11 }
 0x124   : > { %v560_v7 = vadd.f32 %v1090_v8, %v549_v9  ;;  %v562_v14 = vadd.f32 %v1090_v8, %v551_v12  ;;  %v561_v15 = vadd.f32 %v1090_v8, %v550_v6  ;;  %v563_v16 = vadd.f32 %v1090_v8, %v552_v13 }
 0x126   : > { %v564_v17 = vmax.f32 %v560_v7, 0.0  ;;  %v566_v18 = vmax.f32 %v562_v14, 0.0  ;;  %v565_v19 = vmax.f32 %v561_v15, 0.0  ;;  %v567_v20 = vmax.f32 %v563_v16, 0.0 }
 0x128   : > { %1147 = vmatprep.mubr.msk.f32.mxu0 %vm572_vm5, %v564_v17  ;;  %1150 = vmatprep.mubr.msk.f32.mxu1 %vm572_vm5, %v566_v18 }
 0x129   : > { %1148 = vmatmul.mubr.msk.f32.vlgmr.msra.gmra.mxu0 %vm572_vm5, %v565_v19  ;;  %1151 = vmatmul.mubr.msk.f32.vlgmr.msra.gmra.mxu1 %vm572_vm5, %v567_v20 }
 0x1e7   : > { %673 = sbr.rel (%p1095_p10) target bundleno = 524 (0x20c), region = 76 }
 0x1e9   : > { %v1459_v21 = vpop.f32.mrf.mxu0  ;;  %v1461_v22 = vpop.f32.mrf.mxu1 }
 0x1eb   : > { %v1463_v23 = vpop.f32.mrf.mxu0  ;;  %v1465_v24 = vpop.f32.mrf.mxu1 }
 0x1ec   : > { %677 = sbr.rel (%p1096_p11) target bundleno = 499 (0x1f3), region = 80 }
 0x1f1   : > { %vm678_vm6 = vcmask 253952   ;;  %v1300_v25 = vmov 0.0  }
 0x1f2   : > { %679 = vst.msk [vmem:[#allocation4] sm:$0x1] %vm678_vm6, %v1300_v25  ;;  %680 = vst.msk [vmem:[#allocation5] sm:$0x1] %vm678_vm6, %v1300_v25 }
 0x1f3 PF: > { %v682_v26 = vsel %vm572_vm5, %v1463_v23, 0.0  ;;  %v683_v27 = vsel %vm572_vm5, %v1459_v21, 0.0  ;;  %v685_v28 = vsel %vm572_vm5, %v1465_v24, 0.0  ;;  %v699_v30 = vmul.f32 %v1463_v23, %v1463_v23 }
 0x1f4   : > { %v684_v29 = vadd.f32 %v683_v27, %v682_v26  ;;  %v700_v31 = vmul.f32 %v1459_v21, %v1459_v21  ;;  %v687_v32 = vsel %vm572_vm5, %v1461_v22, 0.0  ;;  %v701_v33 = vmul.f32 %v1465_v24, %v1465_v24 }
 0x1f5   : > { %v702_v34 = vmul.f32 %v1461_v22, %v1461_v22  ;;  %v703_v36 = vsel %vm572_vm5, %v699_v30, 0.0  ;;  %vm696_vm7 = vcmask 253952  }
 0x1f6   : > { %v686_v35 = vadd.f32 %v685_v28, %v684_v29  ;;  %v704_v37 = vsel %vm572_vm5, %v700_v31, 0.0  ;;  %v706_v39 = vsel %vm572_vm5, %v701_v33, 0.0 }
 0x1f7   : > { %v705_v38 = vadd.f32 %v704_v37, %v703_v36  ;;  %v708_v41 = vsel %vm572_vm5, %v702_v34, 0.0 }
 0x1f8   : > { %v688_v40 = vadd.f32 %v687_v32, %v686_v35 }
 0x1f9   : > { %v707_v42 = vadd.f32 %v706_v39, %v705_v38  ;;  %v681_v52 = vld [vmem:[#allocation4] sm:$0x1]  ;;  %v698_v58 = vld [vmem:[#allocation5] sm:$0x1] }
 0x1fa   : > { %v689_v43 = vrot.slane %v688_v40, 4 }
 0x1fb   : > { %v709_v44 = vadd.f32 %v708_v41, %v707_v42 }
 0x1fc   : > { %v690_v45 = vadd.f32 %v689_v43, %v688_v40 }
 0x1fd   : > { %v710_v46 = vrot.slane %v709_v44, 4 }
 0x1fe   : > { %v691_v47 = vrot.slane %v690_v45, 2 }
 0x1ff   : > { %v711_v48 = vadd.f32 %v710_v46, %v709_v44 }
 0x200   : > { %v692_v49 = vadd.f32 %v691_v47, %v690_v45 }
 0x201   : > { %v712_v50 = vrot.slane %v711_v48, 2 }
 0x202   : > { %v693_v51 = vrot.slane %v692_v49, 1 }
 0x203   : > { %v713_v53 = vadd.f32 %v712_v50, %v711_v48 }
 0x204   : > { %v694_v54 = vadd.f32 %v693_v51, %v692_v49 }
 0x205   : > { %v714_v55 = vrot.slane %v713_v53, 1 }
 0x206   : > { %v695_v57 = vadd.f32 %v694_v54, %v681_v52 }
 0x207   : > { %v715_v60 = vadd.f32 %v714_v55, %v713_v53 }
 0x208   : > { %697 = vst.msk [vmem:[#allocation4] sm:$0x1] %vm696_vm7, %v695_v57 }
 0x209   : > { %v716_v61 = vadd.f32 %v715_v60, %v698_v58 }
 0x20b   : > { %717 = vst.msk [vmem:[#allocation5] sm:$0x1] %vm696_vm7, %v716_v61 }
 0x20c PF: > { %p1097_p12 = scmp.ne.s32.totalorder %s1284_s10, 2 }
 0x20e   : > { %721 = sbr.rel (%p1097_p12) target bundleno = 1102 (0x44e), region = 84 }
 0x213   : > { %v779_v62 = vld [vmem:[%s1661_s7 + $0x18] sm:$0xff]  ;;  %v778_v63 = vld [vmem:[%s1661_s7 + $0x10] sm:$0xff]  ;;  %v722_v0 = vld [vmem:[#allocation4] sm:$0x1]  ;;  %vm884_vm8 = vcmask 72704   ;;  %v1542_v60 = vand.u32 127, %v521_v56 }
 0x214   : > { %1153 = vmatprep.subr.mxu0 %v779_v62  ;;  %1179 = vmatprep.subr.mxu1 %v779_v62  ;;  %v724_v1 = vld [vmem:[#allocation5] sm:$0x1]  ;;  %v777_v2 = vld [vmem:[%s1661_s7 + $0x8] sm:$0xff]  ;;  %v723_v3 = vmul.f32 0.015625, %v722_v0  ;;  %v1098_v16 = vld [vmem:[%s1659_s5] ss:$0 sm:$0xff] }
 0x215   : > { %1154 = vmatpush3.msra.mxu0 %v779_v62  ;;  %1183 = vmatpush3.msra.mxu1 %v779_v62  ;;  %v725_v4 = vmul.f32 0.015625, %v724_v1  ;;  %v776_v5 = vld [vmem:[%s1661_s7] sm:$0xff]  ;;  %vm941_vm9 = vcmp.ge.s32.totalorder %v1542_v60, 4  ;;  %vm942_vm10 = vcmp.lt.s32.totalorder %v1542_v60, 8  ;;  %vm913_vm12 = vcmp.lt.s32.totalorder %v1542_v60, 3 }
 0x216   : > { %1155 = vmatprep.subr.mxu0 %v778_v63  ;;  %1180 = vmatprep.subr.mxu1 %v778_v63  ;;  %v726_v10 = vmul.f32 %v723_v3, %v723_v3  ;;  %v732_v9 = vrot.slane %v723_v3, %v1441_v59  ;;  %v1100_v35 = vld [vmem:[%s1662_s8] ss:$0 sm:$0xff]  ;;  %vm1552_vm11 = vmand %vm941_vm9, %vm942_vm10  ;;  %vm937_vm13 = vcmp.ge.s32.totalorder %v1542_v60, 3  ;;  %vm938_vm14 = vcmp.lt.s32.totalorder %v1542_v60, 4 }
 0x217   : > { %1156 = vmatpush3.msra.mxu0 %v778_v63  ;;  %1184 = vmatpush3.msra.mxu1 %v778_v63  ;;  %vm966_vm15 = vcmp.ge.s32.totalorder %v1542_v60, 8  ;;  %vm967_vm0 = vcmp.lt.s32.totalorder %v1542_v60, 9  ;;  %vm939_vm1 = vmand %vm937_vm13, %vm938_vm14 }
 0x218   : > { %1157 = vmatprep.subr.mxu0 %v777_v2  ;;  %1181 = vmatprep.subr.mxu1 %v777_v2  ;;  %v727_v11 = vsub.f32 %v725_v4, %v726_v10  ;;  %v734_v12 = vsub.f32 %v1463_v23, %v732_v9  ;;  %v736_v6 = vsub.f32 %v1465_v24, %v732_v9  ;;  %v1099_v23 = vld [vmem:[%s1660_s6] ss:$0 sm:$0xff]  ;;  %vm968_vm2 = vmand %vm966_vm15, %vm967_vm0 }
 0x219   : > { %1158 = vmatpush3.msra.mxu0 %v777_v2  ;;  %1185 = vmatpush3.msra.mxu1 %v777_v2  ;;  %v735_v13 = vsub.f32 %v1459_v21, %v732_v9  ;;  %v737_v7 = vsub.f32 %v1461_v22, %v732_v9  ;;  %vm1616_vm3 = vmor %vm939_vm1, %vm968_vm2 }
 0x21a   : > { %1159 = vmatprep.subr.mxu0 %v776_v5  ;;  %1182 = vmatprep.subr.mxu1 %v776_v5  ;;  %v738_v8 = vadd.f32 1e-05, %v727_v11 }
 0x21b   : > { %1160 = vmatpush3.msra.mxu0 %v776_v5  ;;  %1186 = vmatpush3.msra.mxu1 %v776_v5 }
 0x21c   : > { %1232 = vrsqrt.f32 %v738_v8 }
 0x229   : > { %v1233_v14 = vpop.eup %1232 }
 0x22a   : > { %v744_v15 = vrot.slane %v1233_v14, %v1441_v59 }
 0x22c   : > { %v746_v17 = vmul.f32 %v744_v15, %v734_v12  ;;  %v748_v18 = vmul.f32 %v744_v15, %v736_v6  ;;  %v747_v19 = vmul.f32 %v744_v15, %v735_v13  ;;  %v749_v20 = vmul.f32 %v744_v15, %v737_v7 }
 0x22e   : > { %v757_v24 = vmul.f32 %v1098_v16, %v746_v17  ;;  %v759_v25 = vmul.f32 %v1098_v16, %v748_v18  ;;  %v758_v21 = vmul.f32 %v1098_v16, %v747_v19  ;;  %v760_v26 = vmul.f32 %v1098_v16, %v749_v20 }
 0x230   : > { %v768_v22 = vadd.f32 %v1099_v23, %v757_v24  ;;  %v770_v27 = vadd.f32 %v1099_v23, %v759_v25  ;;  %v769_v28 = vadd.f32 %v1099_v23, %v758_v21  ;;  %v771_v59 = vadd.f32 %v1099_v23, %v760_v26 }
 0x232   : > { %v772_v29 = vmax.f32 %v768_v22, 0.0  ;;  %v774_v30 = vmax.f32 %v770_v27, 0.0  ;;  %v773_v31 = vmax.f32 %v769_v28, 0.0  ;;  %v775_v32 = vmax.f32 %v771_v59, 0.0 }
 0x234   : > { %1161 = vmatprep.mubr.msk.f32.mxu0 %vm572_vm5, %v772_v29  ;;  %1164 = vmatprep.mubr.msk.f32.mxu1 %vm572_vm5, %v774_v30 }
 0x235   : > { %1162 = vmatmul.mubr.msk.f32.vlgmr.msra.gmra.mxu0 %vm572_vm5, %v773_v31  ;;  %1165 = vmatmul.mubr.msk.f32.vlgmr.msra.gmra.mxu1 %vm572_vm5, %v775_v32 }
 0x2f5   : > { %v1163_v33 = vpop.f32.mrf.mxu0  ;;  %v1166_v34 = vpop.f32.mrf.mxu1 }
 0x2f6   : > { %v1521_v38 = vadd.f32 %v1166_v34, %v1100_v35  ;;  %v1527_v41 = vadd.f32 %v1163_v33, %v1100_v35 }
 0x2f7   : > { %v865_v36 = vpop.f32.mrf.mxu0  ;;  %v875_v37 = vpop.f32.mrf.mxu1 }
 0x2f8   : > { %v1523_v39 = vadd.f32 %v1100_v35, %v865_v36  ;;  %v1525_v40 = vadd.f32 %v1100_v35, %v875_v37  ;;  %v894_v44 = vsel %vm884_vm8, %v1521_v38, -inf  ;;  %v888_v45 = vsel %vm884_vm8, %v1527_v41, -inf }
 0x2fa   : > { %v891_v42 = vsel %vm884_vm8, %v1525_v40, -inf  ;;  %v885_v43 = vsel %vm884_vm8, %v1523_v39, -inf }
 0x2fb   : > { %892 = vmax.xlane.f32.xlu1 %v891_v42  ;;  %886 = vmax.xlane.f32.xlu0 %v885_v43 }
 0x2ff   : > { %895 = vmax.xlane.f32.xlu1 %v894_v44  ;;  %889 = vmax.xlane.f32.xlu0 %v888_v45 }
 0x384   : > { %v893_v46 = vpop.xlane.xlu1 %892  ;;  %v887_v47 = vpop.xlane.xlu0 %886 }
 0x385   : > { %v897_v48 = vsub.f32 %v1523_v39, %v887_v47  ;;  %v899_v54 = vsub.f32 %v1525_v40, %v893_v46 }
 0x387   : > { %v901_v49 = vmul.f32 1.442695, %v897_v48  ;;  %v905_v58 = vmul.f32 1.442695, %v899_v54 }
 0x388   : > { %v896_v50 = vpop.xlane.xlu1 %895  ;;  %v890_v51 = vpop.xlane.xlu0 %889 }
 0x389   : > { %v900_v52 = vsub.f32 %v1521_v38, %v896_v50  ;;  %v898_v53 = vsub.f32 %v1527_v41, %v890_v51  ;;  %1234 = vpow2.f32 %v901_v49 }
 0x38b   : > { %v907_v55 = vmul.f32 1.442695, %v900_v52  ;;  %v903_v57 = vmul.f32 1.442695, %v898_v53 }
 0x38d   : > { %1236 = vpow2.f32 %v907_v55 }
 0x38e   : > { %1238 = vpow2.f32 %v903_v57 }
 0x38f   : > { %1240 = vpow2.f32 %v905_v58 }
 0x396   : > { %v1546_v61 = vpop.eup %1234 }
 0x397   : > { %v917_v4 = vsel %vm913_vm12, %v1546_v61, 0.0  ;;  %v946_v9 = vsel %vm1552_vm11, %v1546_v61, 0.0 }
 0x398   : > { %v921_v11 = vsel %vm884_vm8, %v917_v4, 0.0  ;;  %v950_v6 = vsel %vm884_vm8, %v946_v9, 0.0 }
 0x39a   : > { %v1548_v62 = vpop.eup %1236 }
 0x39b   : > { %v1550_v63 = vpop.eup %1238  ;;  %v920_v5 = vsel %vm913_vm12, %v1548_v62, 0.0  ;;  %v949_v14 = vsel %vm1552_vm11, %v1548_v62, 0.0 }
 0x39c   : > { %v947_v56 = vsel %vm1552_vm11, %v1550_v63, 0.0  ;;  %v918_v1 = vsel %vm913_vm12, %v1550_v63, 0.0  ;;  %v1571_v10 = vpop.eup %1240  ;;  %v930_v8 = vsel %vm884_vm8, %v920_v5, 0.0  ;;  %v959_v16 = vsel %vm884_vm8, %v949_v14, 0.0 }
 0x39d   : > { %v953_v2 = vsel %vm884_vm8, %v947_v56, 0.0  ;;  %v924_v3 = vsel %vm884_vm8, %v918_v1, 0.0  ;;  %v919_v12 = vsel %vm913_vm12, %v1571_v10, 0.0  ;;  %v948_v7 = vsel %vm1552_vm11, %v1571_v10, 0.0 }
 0x39e   : > { %954 = vadd.xlane.f32.xlu0 %v953_v2  ;;  %925 = vadd.xlane.f32.xlu1 %v924_v3  ;;  %v927_v13 = vsel %vm884_vm8, %v919_v12, 0.0  ;;  %v956_v15 = vsel %vm884_vm8, %v948_v7, 0.0 }
 0x3a2   : > { %922 = vadd.xlane.f32.xlu0 %v921_v11  ;;  %931 = vadd.xlane.f32.xlu1 %v930_v8 }
 0x3a6   : > { %951 = vadd.xlane.f32.xlu0 %v950_v6  ;;  %928 = vadd.xlane.f32.xlu1 %v927_v13 }
 0x3aa   : > { %957 = vadd.xlane.f32.xlu0 %v956_v15  ;;  %960 = vadd.xlane.f32.xlu1 %v959_v16 }
 0x427   : > { %v955_v17 = vpop.xlane.xlu0 %954  ;;  %v926_v18 = vpop.xlane.xlu1 %925 }
 0x428   : > { %v934_v19 = vsel %vm913_vm12, %v926_v18, 1.0 }
 0x429   : > { %v963_v20 = vsel %vm1552_vm11, %v955_v17, %v934_v19 }
 0x42a   : > { %1242 = vrcp.f32 %v963_v20 }
 0x42b   : > { %v923_v23 = vpop.xlane.xlu0 %922  ;;  %v932_v24 = vpop.xlane.xlu1 %931 }
 0x42c   : > { %v933_v25 = vsel %vm913_vm12, %v923_v23, 1.0  ;;  %v936_v27 = vsel %vm913_vm12, %v932_v24, 1.0 }
 0x42f   : > { %v952_v21 = vpop.xlane.xlu0 %951  ;;  %v929_v26 = vpop.xlane.xlu1 %928 }
 0x430   : > { %v962_v22 = vsel %vm1552_vm11, %v952_v21, %v933_v25  ;;  %v935_v28 = vsel %vm913_vm12, %v929_v26, 1.0 }
 0x431   : > { %1244 = vrcp.f32 %v962_v22 }
 0x433   : > { %v958_v59 = vpop.xlane.xlu0 %957  ;;  %v961_v29 = vpop.xlane.xlu1 %960 }
 0x434   : > { %v964_v30 = vsel %vm1552_vm11, %v958_v59, %v935_v28  ;;  %v965_v31 = vsel %vm1552_vm11, %v961_v29, %v936_v27 }
 0x435   : > { %1246 = vrcp.f32 %v964_v30 }
 0x436   : > { %1248 = vrcp.f32 %v965_v31 }
 0x437   : > { %v1243_v32 = vpop.eup %1242  ;;  %1250 = vtanh.f32 %v1523_v39 }
 0x438   : > { %v975_v33 = vmul.f32 %v1243_v32, %v963_v20  ;;  %1252 = vtanh.f32 %v1527_v41 }
 0x439   : > { %1254 = vtanh.f32 %v1525_v40 }
 0x43a   : > { %v979_v34 = vsub.f32 2.0, %v975_v33  ;;  %1256 = vtanh.f32 %v1521_v38 }
 0x43c   : > { %v983_v37 = vmul.f32 %v1243_v32, %v979_v34 }
 0x43e   : > { %v1245_v35 = vpop.eup %1244  ;;  %v987_v38 = vmul.f32 %v1550_v63, %v983_v37 }
 0x43f   : > { %v974_v36 = vmul.f32 %v1245_v35, %v962_v22 }
 0x441   : > { %v978_v39 = vsub.f32 2.0, %v974_v36 }
 0x442   : > { %v1247_v42 = vpop.eup %1246 }
 0x443   : > { %v1249_v41 = vpop.eup %1248  ;;  %v982_v40 = vmul.f32 %v1245_v35, %v978_v39  ;;  %v976_v43 = vmul.f32 %v1247_v42, %v964_v30 }
 0x444   : > { %v977_v44 = vmul.f32 %v1249_v41, %v965_v31  ;;  %v1251_v48 = vpop.eup %1250 }
 0x445   : > { %v986_v46 = vmul.f32 %v1546_v61, %v982_v40  ;;  %v980_v47 = vsub.f32 2.0, %v976_v43  ;;  %v1253_v50 = vpop.eup %1252 }
 0x446   : > { %v981_v49 = vsub.f32 2.0, %v977_v44  ;;  %v997_v53 = vsel %vm1616_vm3, %v1253_v50, %v987_v38  ;;  %v1255_v57 = vpop.eup %1254 }
 0x447   : > { %v996_v51 = vsel %vm1616_vm3, %v1251_v48, %v986_v46  ;;  %v984_v52 = vmul.f32 %v1247_v42, %v980_v47  ;;  %1001 = vst.msk [vmem:[%s1398_s27 + $0x8] sm:$0xff] %vm884_vm8, %v997_v53  ;;  %v1257_v60 = vpop.eup %1256 }
 0x448   : > { %1000 = vst.msk [vmem:[%s1398_s27] sm:$0xff] %vm884_vm8, %v996_v51  ;;  %v985_v54 = vmul.f32 %v1249_v41, %v981_v49 }
 0x449   : > { %v988_v55 = vmul.f32 %v1571_v10, %v984_v52 }
 0x44a   : > { %v989_v58 = vmul.f32 %v1548_v62, %v985_v54 }
 0x44b   : > { %v998_v61 = vsel %vm1616_vm3, %v1255_v57, %v988_v55 }
 0x44c   : > { %1002 = vst.msk [vmem:[%s1398_s27 + $0x10] sm:$0xff] %vm884_vm8, %v998_v61  ;;  %v999_v63 = vsel %vm1616_vm3, %v1257_v60, %v989_v58 }
 0x44d   : > { %1003 = vst.msk [vmem:[%s1398_s27 + $0x18] sm:$0xff] %vm884_vm8, %v999_v63 }
 0x44e PF: > { %s19_s13 = sadd.s32 1, %s1296_s13   ;;  %s1668_s30 = smov %s1288_s11 }
 0x44f   : > { %p16_p13 = scmp.ge.s32.totalorder %s19_s13, 8   ;;  %s1669_s10 = smov %s1292_s12 }
 0x450   : > { %s1670_s11 = smov %s1673_s14  ;;  %s1671_s12 = smov %s1677_s15 }
 0x451   :  { %18 = sbr.rel (!%p16_p13) target bundleno = 3 (0x3), region = 114 }

</bundles_post_ra>
